<compile_context>
chip_gen: v5e
topology: v5e:2x2
jax: 0.10.0
libtpu: 0.0.40
codegen_flags: <defaults>
</compile_context>

<pallas_src>
import numpy as np
import jax
import jax.numpy as jnp
from jax.experimental import pallas as pl
from jax.experimental.pallas import tpu as pltpu

MASK_TOKEN_ID = 5
_TV_LARGE = 2048  # vocab tile width for large vocabs (multiple of 256)


def _pad_vocab(v, tv_large=_TV_LARGE):
    """Pad V so every vocab tile is full-width and the tile count is even."""
    if v <= tv_large:
        return -(-v // 256) * 256
    n_tiles = -(-v // tv_large)
    if n_tiles % 2:  # even tile count -> clean 2-TensorCore split on v7x
        n_tiles += 1
    return n_tiles * tv_large


# ----------------------------------------------------------------------------
# Pallas kernel: fused MLM head    out = scale * (h @ W + b)
#   (scale = N for the "mean" rows, 1 for the mask-position rows, 0 for pad)
# ----------------------------------------------------------------------------
def _mlm_head_kernel(h_ref, w_ref, b_ref, scale_ref, o_ref):
    acc = jnp.dot(h_ref[...], w_ref[...], preferred_element_type=jnp.float32)
    o_ref[...] = (scale_ref[...] * (acc + b_ref[...])).astype(o_ref.dtype)


def mlm_head(h_bf16, w_bf16, b_f32, scale_f32, *, tm=None, tv=None):
    """h: [R, H] bf16, w: [H, V] bf16, b: [V] f32, scale: [R, 1] f32 -> [R, V] f32."""
    rows, h = h_bf16.shape
    v = w_bf16.shape[1]
    # TODO(synk): no K-axis tiling -- H must fit a single block (fine for
    # BERT-class H); if H is ever tiled, add an f32 VMEM acc scratch with
    # pl.when(k == 0) init / (k == last) finalize.
    assert h % 128 == 0, "H must be a multiple of 128 (pad upstream)"
    if tv is None:
        # Lane-dense vocab tile: single block for small V, else 2048 wide.
        tv = v if v <= _TV_LARGE else _TV_LARGE
    assert v % tv == 0 and (tv == v or tv % 256 == 0)
    if tm is None:
        # Skinny GEMM: the whole row block fits VMEM, so a single row tile
        # guarantees W is streamed from HBM exactly once.
        tm = rows
    assert rows % 16 == 0, "pad the row count to a multiple of 16 upstream"
    assert rows % tm == 0 and (tm == rows or tm % 16 == 0)

    # VMEM budget (double-buffered W / out / h tiles + bias + scale), with
    # headroom; covers v5e's 16 MiB scoped default and stays <= v7x's 64 MiB.
    needed = 2 * (h * tv * 2 + tm * tv * 4 + tm * h * 2 + tv * 4 + tm * 4)
    vmem_limit = int(min(max(needed + (8 << 20), 32 << 20), 64 << 20))

    cost = pl.CostEstimate(
        flops=2 * rows * h * v,
        transcendentals=0,
        bytes_accessed=rows * h * 2 + h * v * 2 + v * 4 + rows * 4 + rows * v * 4,
    )

    # Grid: vocab axis OUTER, row axis inner -> the W block index only depends
    # on the outer axis, so W is never re-fetched even if rows were tiled.
    return pl.pallas_call(
        _mlm_head_kernel,
        out_shape=jax.ShapeDtypeStruct((rows, v), jnp.float32),
        grid_spec=pltpu.PrefetchScalarGridSpec(
            num_scalar_prefetch=0,
            grid=(v // tv, rows // tm),
            in_specs=[
                pl.BlockSpec((tm, h), lambda j, i: (i, 0)),
                pl.BlockSpec((h, tv), lambda j, i: (0, j)),
                pl.BlockSpec((1, tv), lambda j, i: (0, j)),
                pl.BlockSpec((tm, 1), lambda j, i: (i, 0)),
            ],
            out_specs=pl.BlockSpec((tm, tv), lambda j, i: (i, j)),
        ),
        compiler_params=pltpu.CompilerParams(
            dimension_semantics=("parallel", "parallel"),
            vmem_limit_bytes=vmem_limit),
        cost_estimate=cost,
    )(h_bf16, w_bf16, b_f32.reshape(1, v), scale_f32)


# ----------------------------------------------------------------------------
# Device-side forward (one jit): embedding -> fused MLM head -> gathers
# ----------------------------------------------------------------------------
@jax.jit
def _device_forward(embedding, mlm_w_bf16, mlm_b_pad, word, row_index,
                    col_index, schema_ids):
    n, s = word.shape
    h = embedding.shape[1]
    real_v = embedding.shape[0]

    hidden = jnp.take(embedding, word.reshape(-1), axis=0).reshape(n, s, h)

    # logits.sum(0) == N * (mean_n hidden[n] @ W + b)   (algebraic fusion; the
    # mean keeps the bf16 cast in the hidden's native dynamic range)
    hidden_mean = hidden.mean(0)                                    # [S, H] f32

    # Mask-position rows. Faithful to the reference quirk: slice-relative row
    # indices are applied to the FULL tensor (so they hit batch rows 0..c-1),
    # exactly like `logits[row_index, col_index]` in the PyTorch code.
    c, m = row_index.shape
    mask_hidden = hidden[row_index, col_index].reshape(c * m, h)    # [c*m, H]

    n_mask = c * m
    pad = (-(s + n_mask)) % 16          # bf16 packs 2 rows/sublane -> pad to 16
    h_all = jnp.concatenate(
        [hidden_mean, mask_hidden, jnp.zeros((pad, h), jnp.float32)], axis=0)
    scale = jnp.concatenate(
        [jnp.full((s, 1), float(n), jnp.float32),
         jnp.ones((n_mask, 1), jnp.float32),
         jnp.zeros((pad, 1), jnp.float32)], axis=0)

    out = mlm_head(h_all.astype(jnp.bfloat16), mlm_w_bf16, mlm_b_pad, scale)

    summed = out[:s, :real_v]                                       # [S, V]
    single_logits = out[s:s + n_mask, :real_v].reshape(c, m, real_v)
    gathered = jnp.take_along_axis(single_logits[0], schema_ids, axis=1)
    return gathered, summed


# ----------------------------------------------------------------------------
# Synthetic "prompt" module (deterministic params, no checkpoint loads)
# ----------------------------------------------------------------------------
class PromptModel:
    def __init__(self, vocab_size, hidden, key):
        k_emb, k_w, k_b = jax.random.split(key, 3)
        self.embedding = jax.random.normal(k_emb, (vocab_size, hidden), jnp.float32) * 0.02
        self.mlm_w = jax.random.normal(k_w, (hidden, vocab_size), jnp.float32) * 0.02
        self.mlm_b = jax.random.normal(k_b, (vocab_size,), jnp.float32) * 0.02
        self.vocab_size = vocab_size
        # Pad the vocab axis ONCE at init so every W / output tile is full
        # width and lane-dense (unmasked vst) for any real vocab size.
        v_pad = _pad_vocab(vocab_size)
        pad_cols = v_pad - vocab_size
        self.mlm_w_bf16 = jnp.pad(self.mlm_w, ((0, 0), (0, pad_cols))).astype(jnp.bfloat16)
        self.mlm_b_pad = jnp.pad(self.mlm_b, (0, pad_cols))
        # schema_info[label]['id']: [maxl, num_keys] vocab ids (transposed, like
        # `all_id.t()` in prompt.update_schema); maxl=1 so the torch.gather shape
        # constraints of the reference are satisfiable.
        self.schema_info = {
            "E0": {
                "id": jnp.array([[3, 7, 11]], dtype=jnp.int32),      # [1, 3]
                "mask": jnp.array([[1.0, 1.0, 1.0]], dtype=jnp.float32),
            }
        }

    # --- prompt.forward ---
    def forward(self, inputs, args):
        # TODO(synk): attention_mask / token_type_ids accepted but unused by the
        # synthetic encoder (the real transformer has no tiny-Pallas equivalent).
        word = inputs["word"]
        word_np = np.asarray(word)
        num = 0
        gathered_logits = None
        summed_logits = None
        for _batch, arg in enumerate(args):
            # Faithful to the reference: `num` is incremented BEFORE slicing.
            num = num + len(arg["cal_args"])
            sl = word_np[num:num + len(arg["cal_args"])]
            rows, cols = np.nonzero(sl == MASK_TOKEN_ID)
            row_index = rows.reshape(len(arg["cal_args"]), -1)
            col_index = cols.reshape(len(arg["cal_args"]), -1)
            schema_ids = self.schema_info[arg["label"]]["id"]
            gathered_logits, summed_logits = _device_forward(
                self.embedding, self.mlm_w_bf16, self.mlm_b_pad, word,
                jnp.asarray(row_index, jnp.int32),
                jnp.asarray(col_index, jnp.int32),
                schema_ids)
            # TODO(synk): the reference overwrites `logits` with the 2-D sum and
            # would crash on a second iteration; we keep single-iteration semantics.
        # The reference forward returns None (debug prints only); we return the
        # computed tensors so the caller has something to block on / verify.
        return gathered_logits, summed_logits


# ----------------------------------------------------------------------------
# Main
# ----------------------------------------------------------------------------
if __name__ == "__main__":
    key = jax.random.PRNGKey(0)
    k_model, k_tok = jax.random.split(key)

    N, S, H, V = 4, 16, 128, 256
    model = PromptModel(vocab_size=V, hidden=H, key=k_model)

    # Deterministic token ids with exactly one [MASK] (id=5) per row.
    word = jax.random.randint(k_tok, (N, S), 10, V, dtype=jnp.int32)
    mask_cols = np.array([3, 7, 2, 9])
    word = word.at[np.arange(N), mask_cols].set(MASK_TOKEN_ID)
    inputs = {
        "word": word,
        "mask": jnp.ones((N, S), jnp.int32),
        "seg": jnp.zeros((N, S), jnp.int32),
    }
    # One event with two candidate args ("cal_args") labelled 'E0'.
    args = [{"label": "E0", "cal_args": [{"text": "a"}, {"text": "b"}]}]

    gathered, summed = model.forward(inputs, args)
    gathered = jax.block_until_ready(gathered)
    summed = jax.block_until_ready(summed)

    # Pure-JAX f32 reference: full logits, then sum / mask-gather as in the
    # PyTorch code (the kernel path computes the same thing algebraically, with
    # bf16 MXU inputs, hence the relaxed tolerances).
    hidden_ref = jnp.take(model.embedding, word.reshape(-1), axis=0)
    logits_ref = (hidden_ref @ model.mlm_w + model.mlm_b).reshape(N, S, V)
    summed_ref = logits_ref.sum(0)
    sl = np.asarray(word)[2:4]
    rr, cc = np.nonzero(sl == MASK_TOKEN_ID)
    ri = rr.reshape(2, -1)
    ci = cc.reshape(2, -1)
    single_ref = logits_ref[jnp.asarray(ri), jnp.asarray(ci)]
    gathered_ref = jnp.take_along_axis(single_ref[0],
                                       model.schema_info["E0"]["id"], axis=1)

    np.testing.assert_allclose(np.asarray(summed), np.asarray(summed_ref),
                               rtol=2e-2, atol=2e-3)
    np.testing.assert_allclose(np.asarray(gathered), np.asarray(gathered_ref),
                               rtol=2e-2, atol=2e-3)

    print("KERNEL_OK")
</pallas_src>

<mosaic_0001>
module attributes {stable_mosaic.version = 11 : i64} {
  func.func @_mlm_head_kernel(%arg0: i32, %arg1: i32, %arg2: memref<32x128xbf16, #tpu.memory_space<vmem>>, %arg3: memref<128x256xbf16, #tpu.memory_space<vmem>>, %arg4: memref<1x256xf32, #tpu.memory_space<vmem>>, %arg5: memref<32x1xf32, #tpu.memory_space<vmem>>, %arg6: memref<32x256xf32, #tpu.memory_space<vmem>>) attributes {dimension_semantics = [#tpu.dimension_semantics<parallel>, #tpu.dimension_semantics<parallel>], iteration_bounds = array<i64: 1, 1>, scalar_prefetch = 0 : i64, scratch_operands = 0 : i64, tpu.core_type = #tpu.core_type<tc>, window_params = [{transform_indices = @transform_0, window_bounds = array<i64: 32, 128>}, {transform_indices = @transform_1, window_bounds = array<i64: 128, 256>}, {transform_indices = @transform_2, window_bounds = array<i64: 1, 256>}, {transform_indices = @transform_3, window_bounds = array<i64: 32, 1>}, {transform_indices = @transform_4, window_bounds = array<i64: 32, 256>}]} {
    %c0 = arith.constant 0 : index
    %c0_0 = arith.constant 0 : index
    %0 = vector.load %arg2[%c0, %c0_0] : memref<32x128xbf16, #tpu.memory_space<vmem>>, vector<32x128xbf16>
    %c0_1 = arith.constant 0 : index
    %c0_2 = arith.constant 0 : index
    %1 = vector.load %arg3[%c0_1, %c0_2] : memref<128x256xbf16, #tpu.memory_space<vmem>>, vector<128x256xbf16>
    %cst = arith.constant dense<0.000000e+00> : vector<32x256xf32>
    %2 = tpu.matmul %0, %1, %cst {dimension_numbers = #tpu.dot_dimension_numbers<[1], [0], [0], [1], [0, 0, 1, 1], [], []>} : vector<32x128xbf16>, vector<128x256xbf16>, vector<32x256xf32> -> vector<32x256xf32>
    %c0_3 = arith.constant 0 : index
    %c0_4 = arith.constant 0 : index
    %3 = vector.load %arg5[%c0_3, %c0_4] : memref<32x1xf32, #tpu.memory_space<vmem>>, vector<32x1xf32>
    %c0_5 = arith.constant 0 : index
    %c0_6 = arith.constant 0 : index
    %4 = vector.load %arg4[%c0_5, %c0_6] : memref<1x256xf32, #tpu.memory_space<vmem>>, vector<1x256xf32>
    %5 = vector.broadcast %4 : vector<1x256xf32> to vector<32x256xf32>
    %6 = arith.addf %2, %5 : vector<32x256xf32>
    %7 = vector.broadcast %3 : vector<32x1xf32> to vector<32x256xf32>
    %8 = arith.mulf %7, %6 : vector<32x256xf32>
    %c0_7 = arith.constant 0 : index
    %c0_8 = arith.constant 0 : index
    %9 = vector.load %arg6[%c0_7, %c0_8] : memref<32x256xf32, #tpu.memory_space<vmem>>, vector<32x256xf32>
    tpu.vector_store %arg6[%c0_7, %c0_8], %8 {strides = array<i32>} : memref<32x256xf32, #tpu.memory_space<vmem>>, vector<32x256xf32>,
    return
  }
  func.func @transform_0(%arg0: i32, %arg1: i32) -> (i32, i32) {
    %c0_i32 = arith.constant 0 : i32
    %c0_i32_0 = arith.constant 0 : i32
    return %arg1, %c0_i32 : i32, i32
  }
  func.func @transform_1(%arg0: i32, %arg1: i32) -> (i32, i32) {
    %c0_i32 = arith.constant 0 : i32
    %c0_i32_0 = arith.constant 0 : i32
    return %c0_i32, %arg0 : i32, i32
  }
  func.func @transform_2(%arg0: i32, %arg1: i32) -> (i32, i32) {
    %c0_i32 = arith.constant 0 : i32
    %c0_i32_0 = arith.constant 0 : i32
    return %c0_i32, %arg0 : i32, i32
  }
  func.func @transform_3(%arg0: i32, %arg1: i32) -> (i32, i32) {
    %c0_i32 = arith.constant 0 : i32
    %c0_i32_0 = arith.constant 0 : i32
    return %arg1, %c0_i32 : i32, i32
  }
  func.func @transform_4(%arg0: i32, %arg1: i32) -> (i32, i32) {
    %c0_i32 = arith.constant 0 : i32
    return %arg1, %arg0 : i32, i32
  }
}

</mosaic_0001>

<bundles_post_ra>
// kernel: _device_forward.1
= control target key start
LH: loop header
LB: loop body
LE: loop exit
PB: predicated region body
PF: predicated region fallthrough
CT: control target
= control target key end

     0   :  { %v326_v30 = vmov 0   ;;  %s493_s1 = inlined_call_operand.vmem [shape: bf16[128,256], index: 1, kind: input, shape index: {}]   ;;  %s494_s3 = inlined_call_operand.vmem [shape: f32[32,1], index: 3, kind: input, shape index: {}]   ;;  %s495_s0 = inlined_call_operand.vmem [shape: bf16[32,128], index: 0, kind: input, shape index: {}]   ;;  %s496_s2 = inlined_call_operand.vmem [shape: f32[1,256], index: 2, kind: input, shape index: {}]   ;;  %s497_s4 = inlined_call_operand.vmem [shape: f32[32,256], index: 4, kind: output, shape index: {}]  }
   0x1   :  { %v283_v0 = vld [vmem:[%s493_s1 + $0x70] sm:$0xf]  ;;  %v306_v1 = vld [vmem:[%s493_s1 + $0x74] sm:$0xf0]  ;;  %v305_v2 = vld [vmem:[%s493_s1 + $0x74] sm:$0xf]  ;;  %325 = vset.pattern.permute.xlu1 %v326_v30  ;;  %324 = vset.pattern.permute.xlu0 %v326_v30 }
   0x2   :  { %v284_v3 = vor.u32 %v306_v1, %v283_v0  ;;  %v285_v4 = vld [vmem:[%s493_s1 + $0x78] sm:$0xf0]  ;;  %v275_v5 = vld [vmem:[%s493_s1 + $0x60] sm:$0xf]  ;;  %v304_v6 = vld [vmem:[%s493_s1 + $0x64] sm:$0xf0] }
   0x3   :  { %v288_v7 = vor.u32 %v305_v2, %v285_v4  ;;  %v303_v8 = vld [vmem:[%s493_s1 + $0x64] sm:$0xf]  ;;  %v277_v9 = vld [vmem:[%s493_s1 + $0x68] sm:$0xf0]  ;;  %v276_v10 = vor.u32 %v304_v6, %v275_v5  ;;  %v267_v12 = vld [vmem:[%s493_s1 + $0x50] sm:$0xf] }
   0x4   :  { %139 = vmatpush.bf16.msra.mxu0 %v284_v3  ;;  %307 = vmatpush.bf16.msra.mxu2 %v284_v3  ;;  %v280_v11 = vor.u32 %v303_v8, %v277_v9  ;;  %v302_v13 = vld [vmem:[%s493_s1 + $0x54] sm:$0xf0]  ;;  %v301_v14 = vld [vmem:[%s493_s1 + $0x54] sm:$0xf]  ;;  %v269_v15 = vld [vmem:[%s493_s1 + $0x58] sm:$0xf0] }
   0x5   :  { %158 = vmatpush.bf16.msra.mxu1 %v288_v7  ;;  %315 = vmatpush.bf16.msra.mxu3 %v288_v7  ;;  %v268_v16 = vor.u32 %v302_v13, %v267_v12  ;;  %v272_v17 = vor.u32 %v301_v14, %v269_v15  ;;  %v259_v18 = vld [vmem:[%s493_s1 + $0x40] sm:$0xf]  ;;  %v300_v19 = vld [vmem:[%s493_s1 + $0x44] sm:$0xf0]  ;;  %v299_v20 = vld [vmem:[%s493_s1 + $0x44] sm:$0xf] }
   0x6   :  { %v261_v21 = vld [vmem:[%s493_s1 + $0x48] sm:$0xf0]  ;;  %v260_v22 = vor.u32 %v300_v19, %v259_v18  ;;  %v39_v23 = vld [vmem:[%s494_s3 + $0x10] sm:$0xff]  ;;  %v37_v24 = vld [vmem:[%s494_s3] sm:$0xff] }
   0x7   :  { %v264_v25 = vor.u32 %v299_v20, %v261_v21  ;;  %v251_v26 = vld [vmem:[%s493_s1 + $0x30] sm:$0xf]  ;;  %v298_v27 = vld [vmem:[%s493_s1 + $0x34] sm:$0xf0]  ;;  %v297_v28 = vld [vmem:[%s493_s1 + $0x34] sm:$0xf]  ;;  %189 = vperm.xlu1 %325, %v39_v23   ;;  %179 = vperm.xlu0 %324, %v37_v24  }
   0x8   :  { %140 = vmatpush.bf16.msra.mxu0 %v276_v10  ;;  %308 = vmatpush.bf16.msra.mxu2 %v276_v10  ;;  %v253_v29 = vld [vmem:[%s493_s1 + $0x38] sm:$0xf0]  ;;  %v252_v31 = vor.u32 %v298_v27, %v251_v26  ;;  %v243_v33 = vld [vmem:[%s493_s1 + $0x20] sm:$0xf]  ;;  %v296_v34 = vld [vmem:[%s493_s1 + $0x24] sm:$0xf0] }
   0x9   :  { %159 = vmatpush.bf16.msra.mxu1 %v280_v11  ;;  %316 = vmatpush.bf16.msra.mxu3 %v280_v11  ;;  %v256_v32 = vor.u32 %v297_v28, %v253_v29  ;;  %v295_v35 = vld [vmem:[%s493_s1 + $0x24] sm:$0xf]  ;;  %v245_v36 = vld [vmem:[%s493_s1 + $0x28] sm:$0xf0]  ;;  %v244_v37 = vor.u32 %v296_v34, %v243_v33  ;;  %v40_v38 = vld [vmem:[%s494_s3 + $0x18] sm:$0xff] }
   0xa   :  { %v38_v39 = vld [vmem:[%s494_s3 + $0x8] sm:$0xff]  ;;  %v248_v40 = vor.u32 %v295_v35, %v245_v36  ;;  %v235_v41 = vld [vmem:[%s493_s1 + $0x10] sm:$0xf]  ;;  %v294_v42 = vld [vmem:[%s493_s1 + $0x14] sm:$0xf0] }
   0xb   :  { %v293_v43 = vld [vmem:[%s493_s1 + $0x14] sm:$0xf]  ;;  %v237_v44 = vld [vmem:[%s493_s1 + $0x18] sm:$0xf0]  ;;  %v236_v45 = vor.u32 %v294_v42, %v235_v41  ;;  %v227_v47 = vld [vmem:[%s493_s1] sm:$0xf] }
   0xc   :  { %141 = vmatpush.bf16.msra.mxu0 %v268_v16  ;;  %309 = vmatpush.bf16.msra.mxu2 %v268_v16  ;;  %v240_v46 = vor.u32 %v293_v43, %v237_v44  ;;  %v292_v48 = vld [vmem:[%s493_s1 + $0x4] sm:$0xf0]  ;;  %v291_v49 = vld [vmem:[%s493_s1 + $0x4] sm:$0xf]  ;;  %v229_v50 = vld [vmem:[%s493_s1 + $0x8] sm:$0xf0] }
   0xd   :  { %160 = vmatpush.bf16.msra.mxu1 %v272_v17  ;;  %317 = vmatpush.bf16.msra.mxu3 %v272_v17  ;;  %v228_v51 = vor.u32 %v292_v48, %v227_v47  ;;  %v232_v52 = vor.u32 %v291_v49, %v229_v50  ;;  %v289_v53 = vld [vmem:[%s495_s0] sm:$0xff]  ;;  %v290_v54 = vld [vmem:[%s495_s0 + $0x8] sm:$0xff] }
   0xe   :  { %v41_v55 = vld [vmem:[%s496_s2] sm:$0x3] }
   0xf   :  { %194 = vperm.xlu1 %325, %v40_v38   ;;  %184 = vperm.xlu0 %324, %v38_v39   ;;  %v43_v56 = vperm.slane %v41_v55, 0  ;;  %v44_v57 = vperm.slane %v41_v55, 1 }
  0x10   :  { %142 = vmatpush.bf16.msra.mxu0 %v260_v22  ;;  %310 = vmatpush.bf16.msra.mxu2 %v260_v22 }
  0x11   :  { %161 = vmatpush.bf16.msra.mxu1 %v264_v25  ;;  %318 = vmatpush.bf16.msra.mxu3 %v264_v25 }
  0x14   :  { %143 = vmatpush.bf16.msra.mxu0 %v252_v31  ;;  %311 = vmatpush.bf16.msra.mxu2 %v252_v31 }
  0x15   :  { %162 = vmatpush.bf16.msra.mxu1 %v256_v32  ;;  %319 = vmatpush.bf16.msra.mxu3 %v256_v32 }
  0x18   :  { %144 = vmatpush.bf16.msra.mxu0 %v244_v37  ;;  %312 = vmatpush.bf16.msra.mxu2 %v244_v37 }
  0x19   :  { %163 = vmatpush.bf16.msra.mxu1 %v248_v40  ;;  %320 = vmatpush.bf16.msra.mxu3 %v248_v40 }
  0x1c   :  { %145 = vmatpush.bf16.msra.mxu0 %v236_v45  ;;  %313 = vmatpush.bf16.msra.mxu2 %v236_v45 }
  0x1d   :  { %164 = vmatpush.bf16.msra.mxu1 %v240_v46  ;;  %321 = vmatpush.bf16.msra.mxu3 %v240_v46 }
  0x20   :  { %146 = vmatpush.bf16.msra.mxu0 %v228_v51  ;;  %314 = vmatpush.bf16.msra.mxu2 %v228_v51 }
  0x21   :  { %165 = vmatpush.bf16.msra.mxu1 %v232_v52  ;;  %322 = vmatpush.bf16.msra.mxu3 %v232_v52 }
  0x23   :  { %147 = vmatmul.bf16.vlgmr.msra.gmra.mxu0 %v289_v53  ;;  %152 = vmatmul.bf16.vlgmr.msra.gmra.mxu2 %v290_v54 }
  0x24   :  { %166 = vmatmul.bf16.vlgmr.msra.gmra.mxu1 %v289_v53  ;;  %171 = vmatmul.bf16.vlgmr.msra.gmra.mxu3 %v290_v54 }
  0x79   :  { %v180_v58 = vpop.permute.xlu0 %179  ;;  %v190_v1 = vpop.permute.xlu1 %189 }
  0x81   :  { %v185_v11 = vpop.permute.xlu0 %184  ;;  %v195_v18 = vpop.permute.xlu1 %194 }
  0xa0   :  { %v148_v59 = vpop.f32.mrf.mxu0 }
  0xa1   :  { %v149_v60 = vadd.f32 %v148_v59, %v43_v56  ;;  %v167_v61 = vpop.f32.mrf.mxu1 }
  0xa2   :  { %v168_v62 = vadd.f32 %v167_v61, %v44_v57 }
  0xa3   :  { %v197_v63 = vmul.f32 %v180_v58, %v149_v60 }
  0xa4   :  { %v198_v0 = vmul.f32 %v180_v58, %v168_v62 }
  0xa5   :  { %205 = vst [vmem:[%s497_s4] sm:$0xff] %v197_v63 }
  0xa6   :  { %206 = vst [vmem:[%s497_s4 + $0x8] sm:$0xff] %v198_v0  ;;  %v153_v2 = vpop.f32.mrf.mxu2 }
  0xa7   :  { %v154_v3 = vadd.f32 %v153_v2, %v43_v56  ;;  %v172_v4 = vpop.f32.mrf.mxu3 }
  0xa8   :  { %v173_v5 = vadd.f32 %v172_v4, %v44_v57  ;;  %v150_v6 = vpop.f32.mrf.mxu0 }
  0xa9   :  { %v201_v7 = vmul.f32 %v190_v1, %v154_v3  ;;  %v151_v8 = vadd.f32 %v150_v6, %v43_v56  ;;  %v169_v9 = vpop.f32.mrf.mxu1 }
  0xaa   :  { %v202_v10 = vmul.f32 %v190_v1, %v173_v5  ;;  %v170_v12 = vadd.f32 %v169_v9, %v44_v57 }
  0xab   :  { %209 = vst [vmem:[%s497_s4 + $0x20] sm:$0xff] %v201_v7  ;;  %v199_v13 = vmul.f32 %v185_v11, %v151_v8 }
  0xac   :  { %210 = vst [vmem:[%s497_s4 + $0x28] sm:$0xff] %v202_v10  ;;  %v200_v14 = vmul.f32 %v185_v11, %v170_v12 }
  0xad   :  { %207 = vst [vmem:[%s497_s4 + $0x10] sm:$0xff] %v199_v13 }
  0xae   :  { %208 = vst [vmem:[%s497_s4 + $0x18] sm:$0xff] %v200_v14  ;;  %v155_v15 = vpop.f32.mrf.mxu2 }
  0xaf   :  { %v156_v16 = vadd.f32 %v155_v15, %v43_v56  ;;  %v174_v17 = vpop.f32.mrf.mxu3 }
  0xb0   :  { %v175_v19 = vadd.f32 %v174_v17, %v44_v57 }
  0xb1   :  { %v203_v20 = vmul.f32 %v195_v18, %v156_v16 }
  0xb2   :  { %v204_v21 = vmul.f32 %v195_v18, %v175_v19 }
  0xb3   :  { %211 = vst [vmem:[%s497_s4 + $0x30] sm:$0xff] %v203_v20 }
  0xb4   :  { %212 = vst [vmem:[%s497_s4 + $0x38] sm:$0xff] %v204_v21 }

</bundles_post_ra>
